<compile_context>
chip_gen: v7x
topology: tpu7x:2x2x1
jax: 0.10.0
libtpu: 0.0.40
codegen_flags: <defaults>
</compile_context>

<pallas_src>
import jax
import jax.numpy as jnp
from jax import lax
from jax.experimental import pallas as pl
from jax.experimental.pallas import tpu as pltpu


def _round_up(x, m):
    return ((x + m - 1) // m) * m


def _autoencoder_kernel(x_ref, we_ref, be_ref, wd_ref, bd_ref, z_ref, rec_ref):
    x = x_ref[...]

    # Encoder: z = x @ W_enc^T + b_enc
    # W_enc is (latent, input); contract x dim 1 with W_enc dim 1 -> (tb, latent).
    z = lax.dot_general(
        x, we_ref[...],
        dimension_numbers=(((1,), (1,)), ((), ())),
        preferred_element_type=jnp.float32,
    ) + be_ref[...].astype(jnp.float32)
    z_ref[...] = z.astype(z_ref.dtype)

    # Decoder: rec = z @ W_dec^T + b_dec, fed from the f32 z (no down/up cast
    # on the critical path; only cast operands if weights are low precision).
    z_op = z if wd_ref.dtype == jnp.float32 else z.astype(wd_ref.dtype)
    rec = lax.dot_general(
        z_op, wd_ref[...],
        dimension_numbers=(((1,), (1,)), ((), ())),
        preferred_element_type=jnp.float32,
    ) + bd_ref[...].astype(jnp.float32)
    rec_ref[...] = rec.astype(rec_ref.dtype)


def _pick_batch_tile(batch, input_dim, latent_dim, dtype_bytes,
                     vmem_budget_bytes=16 * 1024 * 1024):
    """Largest sublane-aligned batch tile whose double-buffered x/z/rec tiles
    fit a conservative VMEM budget (safe on v7x's 64 MiB / 32 MiB scoped)."""
    per_row = 2 * dtype_bytes * (2 * input_dim + latent_dim)  # 2x for double-buffering
    tb = vmem_budget_bytes // max(per_row, 1)
    tb = max(8, min(int(tb), 1024))
    tb = (tb // 8) * 8                       # f32 sublane multiple
    tb = min(tb, _round_up(batch, 8))        # don't exceed (padded) batch
    return tb


def autoencoder_forward(x, w_enc, b_enc, w_dec, b_dec, *, batch_tile=None):
    """Returns (latent_z, rec_feature), matching the PyTorch forward."""
    batch, input_dim = x.shape
    latent_dim, in_chk = w_enc.shape
    assert in_chk == input_dim and w_dec.shape == (input_dim, latent_dim)
    dtype = x.dtype

    if batch_tile is None:
        batch_tile = _pick_batch_tile(
            batch, input_dim, latent_dim, jnp.dtype(dtype).itemsize)

    padded_batch = _round_up(batch, batch_tile)
    if padded_batch != batch:
        x = jnp.pad(x, ((0, padded_batch - batch), (0, 0)))

    grid = (padded_batch // batch_tile,)

    z, rec = pl.pallas_call(
        _autoencoder_kernel,
        out_shape=(
            jax.ShapeDtypeStruct((padded_batch, latent_dim), dtype),
            jax.ShapeDtypeStruct((padded_batch, input_dim), dtype),
        ),
        grid=grid,
        in_specs=[
            # x: streamed per batch tile (auto double-buffered).
            pl.BlockSpec((batch_tile, input_dim), lambda i: (i, 0)),
            # Weights / biases: constant block index -> VMEM-resident, no re-DMA.
            pl.BlockSpec((latent_dim, input_dim), lambda i: (0, 0)),
            pl.BlockSpec((1, latent_dim), lambda i: (0, 0)),
            pl.BlockSpec((input_dim, latent_dim), lambda i: (0, 0)),
            pl.BlockSpec((1, input_dim), lambda i: (0, 0)),
        ],
        out_specs=(
            pl.BlockSpec((batch_tile, latent_dim), lambda i: (i, 0)),
            pl.BlockSpec((batch_tile, input_dim), lambda i: (i, 0)),
        ),
        compiler_params=pltpu.CompilerParams(
            dimension_semantics=("parallel",),
        ),
    )(x, w_enc, b_enc.reshape(1, -1), w_dec, b_dec.reshape(1, -1))

    if padded_batch != batch:
        z = z[:batch]
        rec = rec[:batch]
    return z, rec


def init_params(key, input_dim, latent_dim, dtype=jnp.float32):
    # Deterministic synthetic init (PyTorch-style shapes: (out, in) weights).
    k1, k2, k3, k4 = jax.random.split(key, 4)
    scale_e = 1.0 / jnp.sqrt(input_dim)
    scale_d = 1.0 / jnp.sqrt(latent_dim)
    w_enc = jax.random.uniform(k1, (latent_dim, input_dim), dtype, -scale_e, scale_e)
    b_enc = jax.random.uniform(k2, (latent_dim,), dtype, -scale_e, scale_e)
    w_dec = jax.random.uniform(k3, (input_dim, latent_dim), dtype, -scale_d, scale_d)
    b_dec = jax.random.uniform(k4, (input_dim,), dtype, -scale_d, scale_d)
    return w_enc, b_enc, w_dec, b_dec


if __name__ == "__main__":
    batch, input_dim, latent_dim = 8, 32, 16

    key = jax.random.PRNGKey(0)
    kx, kp = jax.random.split(key)
    x = jax.random.normal(kx, (batch, input_dim), jnp.float32)
    w_enc, b_enc, w_dec, b_dec = init_params(kp, input_dim, latent_dim)

    z, rec = autoencoder_forward(x, w_enc, b_enc, w_dec, b_dec)
    jax.block_until_ready((z, rec))

    # Reference check against plain JAX.
    z_ref = x @ w_enc.T + b_enc
    rec_ref = z_ref @ w_dec.T + b_dec
    assert z.shape == (batch, latent_dim) and rec.shape == (batch, input_dim)
    assert jnp.allclose(z, z_ref, atol=1e-5)
    assert jnp.allclose(rec, rec_ref, atol=1e-5)

    print("KERNEL_OK")
</pallas_src>

<mosaic_0001>
module attributes {stable_mosaic.version = 11 : i64} {
  func.func @_autoencoder_kernel(%arg0: i32, %arg1: memref<8x32xf32, #tpu.memory_space<vmem>>, %arg2: memref<16x32xf32, #tpu.memory_space<vmem>>, %arg3: memref<1x16xf32, #tpu.memory_space<vmem>>, %arg4: memref<32x16xf32, #tpu.memory_space<vmem>>, %arg5: memref<1x32xf32, #tpu.memory_space<vmem>>, %arg6: memref<8x16xf32, #tpu.memory_space<vmem>>, %arg7: memref<8x32xf32, #tpu.memory_space<vmem>>) attributes {dimension_semantics = [#tpu.dimension_semantics<parallel>], iteration_bounds = array<i64: 1>, scalar_prefetch = 0 : i64, scratch_operands = 0 : i64, tpu.core_type = #tpu.core_type<tc>, window_params = [{transform_indices = @transform_0, window_bounds = array<i64: 8, 32>}, {pipeline_mode = #tpu.pipeline_mode<synchronous>, transform_indices = @transform_1, window_bounds = array<i64: 16, 32>}, {pipeline_mode = #tpu.pipeline_mode<synchronous>, transform_indices = @transform_2, window_bounds = array<i64: 1, 16>}, {pipeline_mode = #tpu.pipeline_mode<synchronous>, transform_indices = @transform_3, window_bounds = array<i64: 32, 16>}, {pipeline_mode = #tpu.pipeline_mode<synchronous>, transform_indices = @transform_4, window_bounds = array<i64: 1, 32>}, {transform_indices = @transform_5, window_bounds = array<i64: 8, 16>}, {transform_indices = @transform_6, window_bounds = array<i64: 8, 32>}]} {
    %c0 = arith.constant 0 : index
    %c0_0 = arith.constant 0 : index
    %0 = vector.load %arg1[%c0, %c0_0] : memref<8x32xf32, #tpu.memory_space<vmem>>, vector<8x32xf32>
    %c0_1 = arith.constant 0 : index
    %c0_2 = arith.constant 0 : index
    %1 = vector.load %arg2[%c0_1, %c0_2] : memref<16x32xf32, #tpu.memory_space<vmem>>, vector<16x32xf32>
    %cst = arith.constant dense<0.000000e+00> : vector<8x16xf32>
    %2 = tpu.matmul %0, %1, %cst {dimension_numbers = #tpu.dot_dimension_numbers<[1], [1], [0], [0], [0, 0, 1, 0], [], []>} : vector<8x32xf32>, vector<16x32xf32>, vector<8x16xf32> -> vector<8x16xf32>
    %c0_3 = arith.constant 0 : index
    %c0_4 = arith.constant 0 : index
    %3 = vector.load %arg3[%c0_3, %c0_4] : memref<1x16xf32, #tpu.memory_space<vmem>>, vector<1x16xf32>
    %4 = vector.broadcast %3 : vector<1x16xf32> to vector<8x16xf32>
    %5 = arith.addf %2, %4 : vector<8x16xf32>
    %c0_5 = arith.constant 0 : index
    %c0_6 = arith.constant 0 : index
    %6 = vector.load %arg6[%c0_5, %c0_6] : memref<8x16xf32, #tpu.memory_space<vmem>>, vector<8x16xf32>
    tpu.vector_store %arg6[%c0_5, %c0_6], %5 {strides = array<i32>} : memref<8x16xf32, #tpu.memory_space<vmem>>, vector<8x16xf32>,
    %c0_7 = arith.constant 0 : index
    %c0_8 = arith.constant 0 : index
    %7 = vector.load %arg4[%c0_7, %c0_8] : memref<32x16xf32, #tpu.memory_space<vmem>>, vector<32x16xf32>
    %cst_9 = arith.constant dense<0.000000e+00> : vector<8x32xf32>
    %8 = tpu.matmul %5, %7, %cst_9 {dimension_numbers = #tpu.dot_dimension_numbers<[1], [1], [0], [0], [0, 0, 1, 0], [], []>} : vector<8x16xf32>, vector<32x16xf32>, vector<8x32xf32> -> vector<8x32xf32>
    %c0_10 = arith.constant 0 : index
    %c0_11 = arith.constant 0 : index
    %9 = vector.load %arg5[%c0_10, %c0_11] : memref<1x32xf32, #tpu.memory_space<vmem>>, vector<1x32xf32>
    %10 = vector.broadcast %9 : vector<1x32xf32> to vector<8x32xf32>
    %11 = arith.addf %8, %10 : vector<8x32xf32>
    %c0_12 = arith.constant 0 : index
    %c0_13 = arith.constant 0 : index
    %12 = vector.load %arg7[%c0_12, %c0_13] : memref<8x32xf32, #tpu.memory_space<vmem>>, vector<8x32xf32>
    tpu.vector_store %arg7[%c0_12, %c0_13], %11 {strides = array<i32>} : memref<8x32xf32, #tpu.memory_space<vmem>>, vector<8x32xf32>,
    return
  }
  func.func @transform_0(%arg0: i32) -> (i32, i32) {
    %c0_i32 = arith.constant 0 : i32
    %c0_i32_0 = arith.constant 0 : i32
    return %arg0, %c0_i32 : i32, i32
  }
  func.func @transform_1(%arg0: i32) -> (i32, i32) {
    %c0_i32 = arith.constant 0 : i32
    %c0_i32_0 = arith.constant 0 : i32
    %c0_i32_1 = arith.constant 0 : i32
    return %c0_i32, %c0_i32_0 : i32, i32
  }
  func.func @transform_2(%arg0: i32) -> (i32, i32) {
    %c0_i32 = arith.constant 0 : i32
    %c0_i32_0 = arith.constant 0 : i32
    %c0_i32_1 = arith.constant 0 : i32
    return %c0_i32, %c0_i32_0 : i32, i32
  }
  func.func @transform_3(%arg0: i32) -> (i32, i32) {
    %c0_i32 = arith.constant 0 : i32
    %c0_i32_0 = arith.constant 0 : i32
    %c0_i32_1 = arith.constant 0 : i32
    return %c0_i32, %c0_i32_0 : i32, i32
  }
  func.func @transform_4(%arg0: i32) -> (i32, i32) {
    %c0_i32 = arith.constant 0 : i32
    %c0_i32_0 = arith.constant 0 : i32
    %c0_i32_1 = arith.constant 0 : i32
    return %c0_i32, %c0_i32_0 : i32, i32
  }
  func.func @transform_5(%arg0: i32) -> (i32, i32) {
    %c0_i32 = arith.constant 0 : i32
    %c0_i32_0 = arith.constant 0 : i32
    return %arg0, %c0_i32 : i32, i32
  }
  func.func @transform_6(%arg0: i32) -> (i32, i32) {
    %c0_i32 = arith.constant 0 : i32
    %c0_i32_0 = arith.constant 0 : i32
    return %arg0, %c0_i32 : i32, i32
  }
}

</mosaic_0001>

<bundles_post_ra>
// kernel: tpu_custom_call.1
= control target key start
LH: loop header
LB: loop body
LE: loop exit
PB: predicated region body
PF: predicated region fallthrough
CT: control target
= control target key end

     0   :  { %12 = vsyncpa [#allocation3], 0  ;;  %vm34_vm0 = vcmask 261120   ;;  %v342_v2 = vmov 0.0|0.0   ;;  %vm343_vm2 = vmmov 0   ;;  %v344_v4 = vmov 0.0   ;;  %s441_s0 = inlined_call_operand.vmem [shape: f32[8,32], index: 0, kind: input, shape index: {}]   ;;  %s442_s1 = inlined_call_operand.vmem [shape: f32[16,32], index: 1, kind: input, shape index: {}]   ;;  %s443_s2 = inlined_call_operand.vmem [shape: f32[1,16], index: 2, kind: input, shape index: {}]   ;;  %s444_s3 = inlined_call_operand.vmem [shape: f32[32,16], index: 3, kind: input, shape index: {}]   ;;  %s445_s4 = inlined_call_operand.vmem [shape: f32[1,32], index: 4, kind: input, shape index: {}]   ;;  %s446_s5 = inlined_call_operand.hbm [shape: f32[8,16], index: 5, kind: output, shape index: {0}]   ;;  %s447_s6 = inlined_call_operand.hbm [shape: f32[8,32], index: 6, kind: output, shape index: {1}]  }
   0x1   :  { %v25_v0 = vld [vmem:[%s442_s1] sm:$0xff]  ;;  %v26_v1 = vld [vmem:[%s442_s1 + $0x8] sm:$0xff]  ;;  %277 = vmatprep.subr.bf16.mxu0 %v342_v2  ;;  %vm279_vm1 = vmpackc.low %vm34_vm0, %vm34_vm0  ;;  %263 = vmatprep.mubr.msk.f32.mxu0 %vm343_vm2, %v344_v4  ;;  %vm114_vm3 = vcmask 130048  }
   0x2   :  { %v278_v3 = vpack.c.bf16 %v26_v1, %v25_v0  ;;  %v116_v5 = vld [vmem:[%s444_s3] sm:$0xff]  ;;  %281 = vmatprep.subr.bf16.mxu1 %v342_v2  ;;  %v117_v6 = vld [vmem:[%s444_s3 + $0x8] sm:$0xff]  ;;  %vm283_vm4 = vmpackc.low %vm114_vm3, %vm114_vm3  ;;  %274 = vmatprep.mubr.msk.f32.mxu1 %vm343_vm2, %v344_v4 }
   0x3   :  { %v282_v7 = vpack.c.bf16 %v117_v6, %v116_v5 }
   0x4   :  { %280 = vmatpush3.bf16.xpose.msk.msra.mxu0 %vm279_vm1, %v278_v3 }
   0x5   :  { %13 = vsyncpa [#allocation5], 0  ;;  %284 = vmatpush3.bf16.xpose.msk.msra.mxu1 %vm283_vm4, %v282_v7  ;;  %v118_v8 = vld [vmem:[%s444_s3 + $0x10] sm:$0xff]  ;;  %v119_v9 = vld [vmem:[%s444_s3 + $0x18] sm:$0xff]  ;;  %s345_s3 = smov [#allocation2]  }
   0x6   :  { %285 = vmatprep.subr.bf16.mxu1 %v342_v2  ;;  %v24_v10 = vld [vmem:[%s441_s0] sm:$0xff]  ;;  %v286_v11 = vpack.c.bf16 %v119_v9, %v118_v8  ;;  %s219_s12 = sshll.u32 %s345_s3, 4  ;;  %s220_s12 = int_to_ptr.vmem [resolvable:$true] %s219_s12 }
   0x7   :  { %v241_v12 = vld [vmem:[%s443_s2] ss:$0 sm:$0xff]  ;;  %s294_s13 = scalar_lea.vmem %s220_s12, 128  ;;  %p299_p1 = scmp.lt.s32.totalorder %s220_s12, %s220_s12 }
   0x8   :  { %p295_p0 = scmp.ne.s32.totalorder %s220_s12, %s294_s13  ;;  %p300_p2 = scmp.lt.s32.totalorder %s294_s13, %s294_s13 }
   0xa   :  { %p301_p3 = por %p300_p2, %p299_p1 }
   0xb   :  { %264 = vmatmul.mubr.msk.f32.vlgmr.msra.gmra.mrb[0].mxu0 %vm34_vm0, %v24_v10 }
   0xc   :  { %p302_p4 = pnand %p301_p3, %p295_p0 }
   0xd   :  { %288 = vmatpush3.bf16.xpose.msk.msra.mxu1 %vm283_vm4, %v286_v11 }
  0xde   :  { %v110_v13 = vpop.f32.mrb[0].mxu0 }
  0xdf   :  { %v111_v14 = vadd.f32 %v241_v12, %v110_v13  ;;  %v265_v15 = vpop.f32.mrb[1].mxu0 }
  0xe1   :  { %115 = vst.msk [vmem:[#allocation2] sm:$0xff] %vm114_vm3, %v111_v14  ;;  %275 = vmatmul.mubr.msk.f32.vlgmr.msra.gmra.mrb[0].mxu1 %vm114_vm3, %v111_v14 }
  0xe2   :  { %305 = shalt.err (!%p302_p4)
}
  0xe3   :  { %s306_s2 = scalar_lea.hbm %s446_s5, 128 }
  0xe4   :  { %p307_p5 = scmp.ne.s32.totalorder %s446_s5, %s306_s2  ;;  %p310_p6 = scmp.lt.u32.totalorder %s306_s2, %s446_s5 }
  0xe6   :  { %p312_p7 = pnand %p310_p6, %p307_p5 }
  0xe8   :  { %315 = shalt.err (!%p312_p7)
}
  0xe9   :  { %222 = dma.vmem_to_hbm [thread:$0]  %s220_s12, 128, %s446_s5, [#allocation3]   ;;  %v245_v16 = vld [vmem:[%s445_s4] ss:$0 sm:$0xff] }
  0xea   :  { %s346_s23 = smov [#allocation4]  }
  0xeb   :  { %s229_s24 = sshll.u32 %s346_s23, 4  ;;  %s230_s24 = int_to_ptr.vmem [resolvable:$true] %s229_s24 }
  0xec   :  { %s316_s25 = scalar_lea.vmem %s230_s24, 128  ;;  %p321_p9 = scmp.lt.s32.totalorder %s230_s24, %s230_s24 }
  0xed   :  { %p317_p8 = scmp.ne.s32.totalorder %s230_s24, %s316_s25  ;;  %p322_p10 = scmp.lt.s32.totalorder %s316_s25, %s316_s25 }
  0xef   :  { %p323_p11 = por %p322_p10, %p321_p9 }
  0xf1   :  { %p324_p12 = pnand %p323_p11, %p317_p8 }
 0x1b4   :  { %v208_v17 = vpop.f32.mrb[0].mxu1 }
 0x1b5   :  { %v209_v18 = vadd.f32 %v245_v16, %v208_v17  ;;  %v276_v19 = vpop.f32.mrb[1].mxu1 }
 0x1b7   :  { %212 = vst.msk [vmem:[#allocation4] sm:$0xff] %vm34_vm0, %v209_v18 }
 0x1b8   :  { %327 = shalt.err (!%p324_p12)
}
 0x1b9   :  { %s328_s27 = scalar_lea.hbm %s447_s6, 128 }
 0x1ba   :  { %p329_p13 = scmp.ne.s32.totalorder %s447_s6, %s328_s27  ;;  %p332_p0 = scmp.lt.u32.totalorder %s328_s27, %s447_s6 }
 0x1bc   :  { %p334_p1 = pnand %p332_p0, %p329_p13 }
 0x1be   :  { %337 = shalt.err (!%p334_p1)
}
 0x1bf   :  { %232 = dma.vmem_to_hbm [thread:$0]  %s230_s24, 128, %s447_s6, [#allocation5]  }
 0x1c0   :  { %338 = dma.done.wait [#allocation3], 128  }
 0x1c1   :  { %339 = vsyncadd [#allocation3], 4294967168 }
 0x1c2   :  { %340 = dma.done.wait [#allocation5], 128  }
 0x1c3   :  { %341 = vsyncadd [#allocation5], 4294967168 }
 0x1c4   :  { %239 = vsyncpa [#allocation3], 1 }
 0x1c5   :  { %240 = vsyncpa [#allocation5], 1 }

</bundles_post_ra>
